<compile_context>
chip_gen: v7x
topology: tpu7x:2x2x1
jax: 0.10.0
libtpu: 0.0.40
codegen_flags: <defaults>
</compile_context>

<pallas_src>
import numpy as np

import jax
import jax.numpy as jnp
from jax import lax
from jax.experimental import pallas as pl
from jax.experimental.pallas import tpu as pltpu

SELU_ALPHA = 1.6732632423543772848170429916717
SELU_SCALE = 1.0507009873554804934193349852946


def _selu(x):
    return SELU_SCALE * jnp.where(x > 0, x, SELU_ALPHA * (jnp.exp(x) - 1.0))


def encoder_kernel(lens_ref, embed_ref,
                   wih_f_ref, wih_b_ref, bih_f_ref, bih_b_ref,
                   whh_f_ref, whh_b_ref,
                   wfc_f_ref, wfc_b_ref, bfc_ref,
                   kv_ref, hid_ref, cell_ref,
                   zxf_ref, zxb_ref, outf_ref, outb_ref):
    TB, _E = embed_ref.shape            # (T*Bc, E)  -- batch chunk, time-major
    Bc = lens_ref.shape[0]              # batch rows handled by this program
    T = TB // Bc
    H = whh_f_ref.shape[0]              # whh is (H, 4H)
    lens = lens_ref[...]                # (Bc, 1) int32

    # ---- Phase 1: input projection hoisted out of the recurrence -----------
    # One big GEMM per direction over all timesteps; LSTM biases folded here.
    x = embed_ref[...]                                              # (T*Bc, E)
    zxf_ref[...] = (jnp.dot(x, wih_f_ref[...],
                            preferred_element_type=jnp.float32) + bih_f_ref[...])
    zxb_ref[...] = (jnp.dot(x, wih_b_ref[...],
                            preferred_element_type=jnp.float32) + bih_b_ref[...])

    whh_f = whh_f_ref[...]              # loop-invariant weight loads, hoisted
    whh_b = whh_b_ref[...]

    def sigmoid(v):                     # tanh form: single EUP op, no divide
        return 0.5 * (jnp.tanh(0.5 * v) + 1.0)

    def gates(z, c):                    # PyTorch gate order: i, f, g, o
        i = sigmoid(z[:, 0:H])
        f = sigmoid(z[:, H:2 * H])
        g = jnp.tanh(z[:, 2 * H:3 * H])
        o = sigmoid(z[:, 3 * H:4 * H])
        c_new = f * c + i * g
        h_new = o * jnp.tanh(c_new)
        return h_new, c_new

    zero = jnp.zeros((Bc, H), jnp.float32)

    # ---- Phase 2: merged fwd/bwd recurrence ---------------------------------
    # fwd advances at t, bwd at T-1-t in the same iteration: two independent
    # dependency chains per step so one direction's MXU/EUP latency hides
    # under the other's gate math.
    def body(t, carry):
        hf, cf, hb, cb = carry
        tb = T - 1 - t
        off_f = pl.multiple_of(t * Bc, Bc)
        off_b = pl.multiple_of(tb * Bc, Bc)
        zf = zxf_ref[pl.ds(off_f, Bc), :] + jnp.dot(
            hf, whh_f, preferred_element_type=jnp.float32)
        zb = zxb_ref[pl.ds(off_b, Bc), :] + jnp.dot(
            hb, whh_b, preferred_element_type=jnp.float32)
        hf_new, cf_new = gates(zf, cf)
        hb_new, cb_new = gates(zb, cb)
        mf = t < lens                   # packed-sequence masking (Bc, 1) bool
        mb = tb < lens
        outf_ref[pl.ds(off_f, Bc), :] = jnp.where(mf, hf_new, 0.0)
        outb_ref[pl.ds(off_b, Bc), :] = jnp.where(mb, hb_new, 0.0)
        return (jnp.where(mf, hf_new, hf), jnp.where(mf, cf_new, cf),
                jnp.where(mb, hb_new, hb), jnp.where(mb, cb_new, cb))

    hf, cf, hb, cb = lax.fori_loop(0, T, body, (zero, zero, zero, zero))
    hid_ref[...] = hf + hb              # hidden1.sum(dim=0)
    cell_ref[...] = cf + cb             # cell1.sum(dim=0)

    # ---- Phase 3: fused fc1|fc2 as two big GEMMs + SELU ---------------------
    kv = (jnp.dot(outf_ref[...], wfc_f_ref[...],
                  preferred_element_type=jnp.float32)
          + jnp.dot(outb_ref[...], wfc_b_ref[...],
                    preferred_element_type=jnp.float32)
          + bfc_ref[...])
    kv_ref[...] = _selu(kv)             # (T*Bc, 2*O) lane-dense output slab


def encoder_forward(ids, seq_lens, params, *, batch_block=None):
    """ids: (B, T) int32 padded token ids; seq_lens: (B,) int32 lengths."""
    B, T = ids.shape
    E = params['embedding'].shape[1]
    H = params['weight_hh_l0'].shape[1]
    O = params['fc1_w'].shape[0]

    # ---- wrapper-side layout prep (glue) ------------------------------------
    # Gather the embedding time-major directly (no (B,T,E)->(T,B,E) transpose).
    embed_tm = jnp.take(params['embedding'], ids.T, axis=0).astype(jnp.float32)  # (T,B,E)

    # Pad batch to a sublane multiple; pick a batch chunk so the independent
    # batch dimension can shard across TensorCores (v7x megacore).
    Bp = ((B + 7) // 8) * 8
    if batch_block is None:
        batch_block = Bp // 2 if (Bp >= 16 and Bp % 16 == 0) else Bp
    bb = batch_block
    assert bb % 8 == 0, "batch_block must be a multiple of 8 (sublane tile)"
    Bp = ((Bp + bb - 1) // bb) * bb
    nb = Bp // bb

    pad_b = Bp - B
    if pad_b:
        embed_tm = jnp.pad(embed_tm, ((0, 0), (0, pad_b), (0, 0)))
    lens_p = jnp.pad(seq_lens.astype(jnp.int32), (0, pad_b)).reshape(Bp, 1)

    # Pre-split into contiguous batch chunks, flattened time-major per chunk:
    # (nb, T*bb, E). For nb == 1 this is a pure reshape (no data movement).
    embed_cs = (embed_tm.reshape(T, nb, bb, E)
                .transpose(1, 0, 2, 3).reshape(nb, T * bb, E))

    # ---- weight prep: transpose once, fold LSTM biases, fuse fc1|fc2 --------
    wih_f = params['weight_ih_l0'].T                          # (E, 4H)
    wih_b = params['weight_ih_l0_reverse'].T
    whh_f = params['weight_hh_l0'].T                          # (H, 4H)
    whh_b = params['weight_hh_l0_reverse'].T
    bih_f = (params['bias_ih_l0'] + params['bias_hh_l0']).reshape(1, 4 * H)
    bih_b = (params['bias_ih_l0_reverse'] + params['bias_hh_l0_reverse']).reshape(1, 4 * H)

    w1 = params['fc1_w'].T                                    # (2H, O)
    w2 = params['fc2_w'].T
    wfc_f = jnp.concatenate([w1[:H], w2[:H]], axis=1)         # (H, 2O)
    wfc_b = jnp.concatenate([w1[H:], w2[H:]], axis=1)         # (H, 2O)
    bfc = jnp.concatenate([params['fc1_b'], params['fc2_b']]).reshape(1, 2 * O)

    # ---- VMEM budget & advisory cost estimate -------------------------------
    f32 = 4
    resident = f32 * (
        2 * (T * bb * E)                  # embed chunk (double-buffered)
        + 2 * (T * bb * 2 * O)            # kv chunk (double-buffered)
        + 2 * (T * bb * 4 * H)            # zxf / zxb scratch
        + 2 * (T * bb * H)                # outf / outb scratch
        + 2 * (E * 4 * H + H * 4 * H + H * 2 * O + 4 * H) + 2 * O
        + 4 * bb * H + 2 * bb)
    vmem_limit = int(min(max(2 * resident, 32 * 1024 * 1024), 64 * 1024 * 1024))
    # TODO(synk): for very large T*B the time axis should additionally be
    # streamed in chunks (manual double-buffered DMA) to fit v7x's 64 MiB VMEM;
    # not needed at these shapes.
    # TODO(synk): the batched GEMMs could use bf16 operands on v6e/v7x; kept
    # f32 here to stay well inside the 2e-3 check tolerance.

    M = T * Bp
    flops = ((2 * M * E * 4 * H) * 2              # input projections
             + (2 * Bp * H * 4 * H) * T * 2       # recurrent matmuls
             + (2 * M * H * 2 * O) * 2)           # fused fc1/fc2
    trans = (5 * Bp * H) * T * 2 + M * 2 * O
    bytes_acc = f32 * (M * E + M * 2 * O + 2 * Bp * H + Bp
                       + 2 * (E * 4 * H + H * 4 * H + H * 2 * O + 4 * H) + 2 * O)

    def wspec(shape):
        return pl.BlockSpec(shape, lambda i: (0,) * len(shape))

    kv, hid, cell = pl.pallas_call(
        encoder_kernel,
        out_shape=(
            jax.ShapeDtypeStruct((nb, T * bb, 2 * O), jnp.float32),   # key|value
            jax.ShapeDtypeStruct((Bp, H), jnp.float32),               # hidden
            jax.ShapeDtypeStruct((Bp, H), jnp.float32),               # cell
        ),
        grid=(nb,),
        in_specs=[
            pl.BlockSpec((bb, 1), lambda i: (i, 0)),                  # lens
            pl.BlockSpec((None, T * bb, E), lambda i: (i, 0, 0)),     # embed chunk
            wspec((E, 4 * H)), wspec((E, 4 * H)),
            wspec((1, 4 * H)), wspec((1, 4 * H)),
            wspec((H, 4 * H)), wspec((H, 4 * H)),
            wspec((H, 2 * O)), wspec((H, 2 * O)), wspec((1, 2 * O)),
        ],
        out_specs=(
            pl.BlockSpec((None, T * bb, 2 * O), lambda i: (i, 0, 0)),
            pl.BlockSpec((bb, H), lambda i: (i, 0)),
            pl.BlockSpec((bb, H), lambda i: (i, 0)),
        ),
        scratch_shapes=[
            pltpu.VMEM((T * bb, 4 * H), jnp.float32),   # zxf
            pltpu.VMEM((T * bb, 4 * H), jnp.float32),   # zxb
            pltpu.VMEM((T * bb, H), jnp.float32),       # outf
            pltpu.VMEM((T * bb, H), jnp.float32),       # outb
        ],
        compiler_params=pltpu.CompilerParams(
            dimension_semantics=("parallel",),
            vmem_limit_bytes=vmem_limit),
        cost_estimate=pl.CostEstimate(flops=flops, transcendentals=trans,
                                      bytes_accessed=bytes_acc),
    )(lens_p, embed_cs, wih_f, wih_b, bih_f, bih_b,
      whh_f, whh_b, wfc_f, wfc_b, bfc)

    # Un-chunk, back to batch-first, split fused key|value (one transpose).
    kv = (kv.reshape(nb, T, bb, 2 * O).transpose(0, 2, 1, 3)
          .reshape(Bp, T, 2 * O)[:B])
    key = kv[:, :, :O]
    value = kv[:, :, O:]
    return seq_lens, key, value, hid[:B], cell[:B]


# ----------------------- pure-JAX reference (for checking) ------------------
def reference_forward(ids, seq_lens, p):
    embed = jnp.take(p['embedding'], ids, axis=0).astype(jnp.float32)  # (B,T,E)
    B, T, _ = embed.shape
    H = p['weight_hh_l0'].shape[1]

    def run_dir(wih, whh, bih, bhh, reverse):
        b = bih + bhh

        def cell(carry, t):
            h, c = carry
            x_t = embed[:, t, :]
            z = x_t @ wih.T + h @ whh.T + b
            i = jax.nn.sigmoid(z[:, :H])
            f = jax.nn.sigmoid(z[:, H:2 * H])
            g = jnp.tanh(z[:, 2 * H:3 * H])
            o = jax.nn.sigmoid(z[:, 3 * H:])
            c_new = f * c + i * g
            h_new = o * jnp.tanh(c_new)
            mask = (t < seq_lens)[:, None]
            out = jnp.where(mask, h_new, 0.0)
            return (jnp.where(mask, h_new, h), jnp.where(mask, c_new, c)), out

        ts = jnp.arange(T - 1, -1, -1) if reverse else jnp.arange(T)
        (h, c), outs = lax.scan(cell, (jnp.zeros((B, H)), jnp.zeros((B, H))), ts)
        if reverse:
            outs = outs[::-1]
        return jnp.transpose(outs, (1, 0, 2)), h, c

    out_f, h_f, c_f = run_dir(p['weight_ih_l0'], p['weight_hh_l0'],
                              p['bias_ih_l0'], p['bias_hh_l0'], False)
    out_b, h_b, c_b = run_dir(p['weight_ih_l0_reverse'], p['weight_hh_l0_reverse'],
                              p['bias_ih_l0_reverse'], p['bias_hh_l0_reverse'], True)
    output = jnp.concatenate([out_f, out_b], axis=-1)          # (B,T,2H)
    key = _selu(output @ p['fc1_w'].T + p['fc1_b'])
    value = _selu(output @ p['fc2_w'].T + p['fc2_b'])
    return seq_lens, key, value, h_f + h_b, c_f + c_b


# --------------------------- deterministic params ---------------------------
def init_params(key, vocab_size, embed_size, hidden_size, out_size):
    ks = jax.random.split(key, 16)

    def u(k, shape, bound):
        return jax.random.uniform(k, shape, jnp.float32, -bound, bound)

    kl = 1.0 / float(np.sqrt(hidden_size))
    kf = 1.0 / float(np.sqrt(2 * hidden_size))
    p = {
        'embedding': jax.random.normal(ks[0], (vocab_size, embed_size), jnp.float32),
        'weight_ih_l0': u(ks[1], (4 * hidden_size, embed_size), kl),
        'weight_hh_l0': u(ks[2], (4 * hidden_size, hidden_size), kl),
        'bias_ih_l0': u(ks[3], (4 * hidden_size,), kl),
        'bias_hh_l0': u(ks[4], (4 * hidden_size,), kl),
        'weight_ih_l0_reverse': u(ks[5], (4 * hidden_size, embed_size), kl),
        'weight_hh_l0_reverse': u(ks[6], (4 * hidden_size, hidden_size), kl),
        'bias_ih_l0_reverse': u(ks[7], (4 * hidden_size,), kl),
        'bias_hh_l0_reverse': u(ks[8], (4 * hidden_size,), kl),
        'fc1_w': u(ks[9], (out_size, 2 * hidden_size), kf),
        'fc1_b': u(ks[10], (out_size,), kf),
        'fc2_w': u(ks[11], (out_size, 2 * hidden_size), kf),
        'fc2_b': u(ks[12], (out_size,), kf),
    }
    return p
# TODO(synk): nn.Dropout (embed_drop) is defined in Encoder.__init__ but never
# used in forward(), so it is intentionally omitted.


if __name__ == "__main__":
    vocab_size, embed_size, hidden_size, out_size = 16, 32, 32, 32
    B, T = 2, 8

    root = jax.random.PRNGKey(0)
    k_param, k_ids = jax.random.split(root)
    params = init_params(k_param, vocab_size, embed_size, hidden_size, out_size)

    seq_lens = jnp.array([8, 5], dtype=jnp.int32)
    ids = jax.random.randint(k_ids, (B, T), 0, vocab_size, dtype=jnp.int32)
    # zero out padding positions, mimicking what pad_packed_sequence produces
    pad_mask = jnp.arange(T)[None, :] < seq_lens[:, None]
    ids = jnp.where(pad_mask, ids, 0)

    fwd = jax.jit(encoder_forward)
    lens_out, key, value, hidden, cell = fwd(ids, seq_lens, params)
    jax.block_until_ready((key, value, hidden, cell))

    # sanity check against a pure-JAX reference of the same semantics
    _, key_r, value_r, hidden_r, cell_r = jax.jit(reference_forward)(ids, seq_lens, params)
    assert key.shape == (B, T, out_size) and value.shape == (B, T, out_size)
    assert hidden.shape == (B, hidden_size) and cell.shape == (B, hidden_size)
    np.testing.assert_allclose(np.asarray(key), np.asarray(key_r), rtol=2e-3, atol=2e-3)
    np.testing.assert_allclose(np.asarray(value), np.asarray(value_r), rtol=2e-3, atol=2e-3)
    np.testing.assert_allclose(np.asarray(hidden), np.asarray(hidden_r), rtol=2e-3, atol=2e-3)
    np.testing.assert_allclose(np.asarray(cell), np.asarray(cell_r), rtol=2e-3, atol=2e-3)

    print("KERNEL_OK")
</pallas_src>

<mosaic_0001>
module attributes {stable_mosaic.version = 11 : i64} {
  func.func @encoder_kernel(%arg0: i32, %arg1: memref<8x1xi32, #tpu.memory_space<vmem>>, %arg2: memref<1x64x32xf32, #tpu.memory_space<vmem>>, %arg3: memref<32x128xf32, #tpu.memory_space<vmem>>, %arg4: memref<32x128xf32, #tpu.memory_space<vmem>>, %arg5: memref<1x128xf32, #tpu.memory_space<vmem>>, %arg6: memref<1x128xf32, #tpu.memory_space<vmem>>, %arg7: memref<32x128xf32, #tpu.memory_space<vmem>>, %arg8: memref<32x128xf32, #tpu.memory_space<vmem>>, %arg9: memref<32x64xf32, #tpu.memory_space<vmem>>, %arg10: memref<32x64xf32, #tpu.memory_space<vmem>>, %arg11: memref<1x64xf32, #tpu.memory_space<vmem>>, %arg12: memref<1x64x64xf32, #tpu.memory_space<vmem>>, %arg13: memref<8x32xf32, #tpu.memory_space<vmem>>, %arg14: memref<8x32xf32, #tpu.memory_space<vmem>>, %arg15: memref<64x128xf32, #tpu.memory_space<vmem>>, %arg16: memref<64x128xf32, #tpu.memory_space<vmem>>, %arg17: memref<64x32xf32, #tpu.memory_space<vmem>>, %arg18: memref<64x32xf32, #tpu.memory_space<vmem>>) attributes {dimension_semantics = [#tpu.dimension_semantics<parallel>], iteration_bounds = array<i64: 1>, scalar_prefetch = 0 : i64, scratch_operands = 4 : i64, tpu.core_type = #tpu.core_type<tc>, window_params = [{transform_indices = @transform_0, window_bounds = array<i64: 8, 1>}, {transform_indices = @transform_1, window_bounds = array<i64: 1, 64, 32>}, {pipeline_mode = #tpu.pipeline_mode<synchronous>, transform_indices = @transform_2, window_bounds = array<i64: 32, 128>}, {pipeline_mode = #tpu.pipeline_mode<synchronous>, transform_indices = @transform_3, window_bounds = array<i64: 32, 128>}, {pipeline_mode = #tpu.pipeline_mode<synchronous>, transform_indices = @transform_4, window_bounds = array<i64: 1, 128>}, {pipeline_mode = #tpu.pipeline_mode<synchronous>, transform_indices = @transform_5, window_bounds = array<i64: 1, 128>}, {pipeline_mode = #tpu.pipeline_mode<synchronous>, transform_indices = @transform_6, window_bounds = array<i64: 32, 128>}, {pipeline_mode = #tpu.pipeline_mode<synchronous>, transform_indices = @transform_7, window_bounds = array<i64: 32, 128>}, {pipeline_mode = #tpu.pipeline_mode<synchronous>, transform_indices = @transform_8, window_bounds = array<i64: 32, 64>}, {pipeline_mode = #tpu.pipeline_mode<synchronous>, transform_indices = @transform_9, window_bounds = array<i64: 32, 64>}, {pipeline_mode = #tpu.pipeline_mode<synchronous>, transform_indices = @transform_10, window_bounds = array<i64: 1, 64>}, {transform_indices = @transform_11, window_bounds = array<i64: 1, 64, 64>}, {transform_indices = @transform_12, window_bounds = array<i64: 8, 32>}, {transform_indices = @transform_13, window_bounds = array<i64: 8, 32>}]} {
    %c0 = arith.constant 0 : index
    %c0_0 = arith.constant 0 : index
    %0 = vector.load %arg1[%c0, %c0_0] : memref<8x1xi32, #tpu.memory_space<vmem>>, vector<8x1xi32>
    %c0_1 = arith.constant 0 : index
    %c0_2 = arith.constant 0 : index
    %c0_3 = arith.constant 0 : index
    %1 = vector.load %arg2[%c0_1, %c0_2, %c0_3] : memref<1x64x32xf32, #tpu.memory_space<vmem>>, vector<1x64x32xf32>
    %2 = vector.shape_cast %1 : vector<1x64x32xf32> to vector<64x32xf32>
    %c0_4 = arith.constant 0 : index
    %c0_5 = arith.constant 0 : index
    %3 = vector.load %arg3[%c0_4, %c0_5] : memref<32x128xf32, #tpu.memory_space<vmem>>, vector<32x128xf32>
    %cst = arith.constant dense<0.000000e+00> : vector<64x128xf32>
    %4 = tpu.matmul %2, %3, %cst {dimension_numbers = #tpu.dot_dimension_numbers<[1], [0], [0], [1], [0, 0, 1, 1], [], []>} : vector<64x32xf32>, vector<32x128xf32>, vector<64x128xf32> -> vector<64x128xf32>
    %c0_6 = arith.constant 0 : index
    %c0_7 = arith.constant 0 : index
    %5 = vector.load %arg5[%c0_6, %c0_7] : memref<1x128xf32, #tpu.memory_space<vmem>>, vector<1x128xf32>
    %6 = vector.broadcast %5 : vector<1x128xf32> to vector<64x128xf32>
    %7 = arith.addf %4, %6 : vector<64x128xf32>
    %c0_8 = arith.constant 0 : index
    %c0_9 = arith.constant 0 : index
    %8 = vector.load %arg15[%c0_8, %c0_9] : memref<64x128xf32, #tpu.memory_space<vmem>>, vector<64x128xf32>
    tpu.vector_store %arg15[%c0_8, %c0_9], %7 {strides = array<i32>} : memref<64x128xf32, #tpu.memory_space<vmem>>, vector<64x128xf32>,
    %c0_10 = arith.constant 0 : index
    %c0_11 = arith.constant 0 : index
    %9 = vector.load %arg4[%c0_10, %c0_11] : memref<32x128xf32, #tpu.memory_space<vmem>>, vector<32x128xf32>
    %cst_12 = arith.constant dense<0.000000e+00> : vector<64x128xf32>
    %10 = tpu.matmul %2, %9, %cst_12 {dimension_numbers = #tpu.dot_dimension_numbers<[1], [0], [0], [1], [0, 0, 1, 1], [], []>} : vector<64x32xf32>, vector<32x128xf32>, vector<64x128xf32> -> vector<64x128xf32>
    %c0_13 = arith.constant 0 : index
    %c0_14 = arith.constant 0 : index
    %11 = vector.load %arg6[%c0_13, %c0_14] : memref<1x128xf32, #tpu.memory_space<vmem>>, vector<1x128xf32>
    %12 = vector.broadcast %11 : vector<1x128xf32> to vector<64x128xf32>
    %13 = arith.addf %10, %12 : vector<64x128xf32>
    %c0_15 = arith.constant 0 : index
    %c0_16 = arith.constant 0 : index
    %14 = vector.load %arg16[%c0_15, %c0_16] : memref<64x128xf32, #tpu.memory_space<vmem>>, vector<64x128xf32>
    tpu.vector_store %arg16[%c0_15, %c0_16], %13 {strides = array<i32>} : memref<64x128xf32, #tpu.memory_space<vmem>>, vector<64x128xf32>,
    %c0_17 = arith.constant 0 : index
    %c0_18 = arith.constant 0 : index
    %15 = vector.load %arg7[%c0_17, %c0_18] : memref<32x128xf32, #tpu.memory_space<vmem>>, vector<32x128xf32>
    %c0_19 = arith.constant 0 : index
    %c0_20 = arith.constant 0 : index
    %16 = vector.load %arg8[%c0_19, %c0_20] : memref<32x128xf32, #tpu.memory_space<vmem>>, vector<32x128xf32>
    %cst_21 = arith.constant 0.000000e+00 : f32
    %17 = vector.broadcast %cst_21 : f32 to vector<8x32xf32>
    %c0_i32 = arith.constant 0 : i32
    %c8_i32 = arith.constant 8 : i32
    %18 = arith.addi %c0_i32, %c8_i32 : i32
    %c1_i32 = arith.constant 1 : i32
    %19:4 = scf.for %arg19 = %c0_i32 to %18 step %c1_i32 iter_args(%arg20 = %17, %arg21 = %17, %arg22 = %17, %arg23 = %17) -> (vector<8x32xf32>, vector<8x32xf32>, vector<8x32xf32>, vector<8x32xf32>)  : i32 {
      %c7_i32 = arith.constant 7 : i32
      %47 = arith.subi %c7_i32, %arg19 : i32
      %c8_i32_46 = arith.constant 8 : i32
      %48 = arith.muli %arg19, %c8_i32_46 : i32
      %49 = tpu.assume_multiple %48, 8 : i32
      %c8_i32_47 = arith.constant 8 : i32
      %50 = arith.muli %47, %c8_i32_47 : i32
      %51 = tpu.assume_multiple %50, 8 : i32
      %52 = arith.index_cast %49 : i32 to index
      %c0_48 = arith.constant 0 : index
      %53 = vector.load %arg15[%52, %c0_48] : memref<64x128xf32, #tpu.memory_space<vmem>>, vector<8x128xf32>
      %cst_49 = arith.constant dense<0.000000e+00> : vector<8x128xf32>
      %54 = tpu.matmul %arg20, %15, %cst_49 {dimension_numbers = #tpu.dot_dimension_numbers<[1], [0], [0], [1], [0, 0, 1, 1], [], []>} : vector<8x32xf32>, vector<32x128xf32>, vector<8x128xf32> -> vector<8x128xf32>
      %55 = arith.addf %53, %54 : vector<8x128xf32>
      %56 = arith.index_cast %51 : i32 to index
      %c0_50 = arith.constant 0 : index
      %57 = vector.load %arg16[%56, %c0_50] : memref<64x128xf32, #tpu.memory_space<vmem>>, vector<8x128xf32>
      %cst_51 = arith.constant dense<0.000000e+00> : vector<8x128xf32>
      %58 = tpu.matmul %arg22, %16, %cst_51 {dimension_numbers = #tpu.dot_dimension_numbers<[1], [0], [0], [1], [0, 0, 1, 1], [], []>} : vector<8x32xf32>, vector<32x128xf32>, vector<8x128xf32> -> vector<8x128xf32>
      %59 = arith.addf %57, %58 : vector<8x128xf32>
      %60 = vector.extract_strided_slice %55 {offsets = [0, 0], sizes = [8, 32], strides = [1, 1]} : vector<8x128xf32> to vector<8x32xf32>
      %cst_52 = arith.constant 5.000000e-01 : f32
      %61 = vector.broadcast %cst_52 : f32 to vector<8x32xf32>
      %62 = arith.mulf %61, %60 : vector<8x32xf32>
      %63 = math.tanh %62 : vector<8x32xf32>
      %cst_53 = arith.constant 1.000000e+00 : f32
      %64 = vector.broadcast %cst_53 : f32 to vector<8x32xf32>
      %65 = arith.addf %63, %64 : vector<8x32xf32>
      %cst_54 = arith.constant 5.000000e-01 : f32
      %66 = vector.broadcast %cst_54 : f32 to vector<8x32xf32>
      %67 = arith.mulf %66, %65 : vector<8x32xf32>
      %68 = vector.extract_strided_slice %55 {offsets = [0, 32], sizes = [8, 32], strides = [1, 1]} : vector<8x128xf32> to vector<8x32xf32>
      %cst_55 = arith.constant 5.000000e-01 : f32
      %69 = vector.broadcast %cst_55 : f32 to vector<8x32xf32>
      %70 = arith.mulf %69, %68 : vector<8x32xf32>
      %71 = math.tanh %70 : vector<8x32xf32>
      %cst_56 = arith.constant 1.000000e+00 : f32
      %72 = vector.broadcast %cst_56 : f32 to vector<8x32xf32>
      %73 = arith.addf %71, %72 : vector<8x32xf32>
      %cst_57 = arith.constant 5.000000e-01 : f32
      %74 = vector.broadcast %cst_57 : f32 to vector<8x32xf32>
      %75 = arith.mulf %74, %73 : vector<8x32xf32>
      %76 = vector.extract_strided_slice %55 {offsets = [0, 64], sizes = [8, 32], strides = [1, 1]} : vector<8x128xf32> to vector<8x32xf32>
      %77 = math.tanh %76 : vector<8x32xf32>
      %78 = vector.extract_strided_slice %55 {offsets = [0, 96], sizes = [8, 32], strides = [1, 1]} : vector<8x128xf32> to vector<8x32xf32>
      %cst_58 = arith.constant 5.000000e-01 : f32
      %79 = vector.broadcast %cst_58 : f32 to vector<8x32xf32>
      %80 = arith.mulf %79, %78 : vector<8x32xf32>
      %81 = math.tanh %80 : vector<8x32xf32>
      %cst_59 = arith.constant 1.000000e+00 : f32
      %82 = vector.broadcast %cst_59 : f32 to vector<8x32xf32>
      %83 = arith.addf %81, %82 : vector<8x32xf32>
      %cst_60 = arith.constant 5.000000e-01 : f32
      %84 = vector.broadcast %cst_60 : f32 to vector<8x32xf32>
      %85 = arith.mulf %84, %83 : vector<8x32xf32>
      %86 = arith.mulf %75, %arg21 : vector<8x32xf32>
      %87 = arith.mulf %67, %77 : vector<8x32xf32>
      %88 = arith.addf %86, %87 : vector<8x32xf32>
      %89 = math.tanh %88 : vector<8x32xf32>
      %90 = arith.mulf %85, %89 : vector<8x32xf32>
      %91 = vector.extract_strided_slice %59 {offsets = [0, 0], sizes = [8, 32], strides = [1, 1]} : vector<8x128xf32> to vector<8x32xf32>
      %cst_61 = arith.constant 5.000000e-01 : f32
      %92 = vector.broadcast %cst_61 : f32 to vector<8x32xf32>
      %93 = arith.mulf %92, %91 : vector<8x32xf32>
      %94 = math.tanh %93 : vector<8x32xf32>
      %cst_62 = arith.constant 1.000000e+00 : f32
      %95 = vector.broadcast %cst_62 : f32 to vector<8x32xf32>
      %96 = arith.addf %94, %95 : vector<8x32xf32>
      %cst_63 = arith.constant 5.000000e-01 : f32
      %97 = vector.broadcast %cst_63 : f32 to vector<8x32xf32>
      %98 = arith.mulf %97, %96 : vector<8x32xf32>
      %99 = vector.extract_strided_slice %59 {offsets = [0, 32], sizes = [8, 32], strides = [1, 1]} : vector<8x128xf32> to vector<8x32xf32>
      %cst_64 = arith.constant 5.000000e-01 : f32
      %100 = vector.broadcast %cst_64 : f32 to vector<8x32xf32>
      %101 = arith.mulf %100, %99 : vector<8x32xf32>
      %102 = math.tanh %101 : vector<8x32xf32>
      %cst_65 = arith.constant 1.000000e+00 : f32
      %103 = vector.broadcast %cst_65 : f32 to vector<8x32xf32>
      %104 = arith.addf %102, %103 : vector<8x32xf32>
      %cst_66 = arith.constant 5.000000e-01 : f32
      %105 = vector.broadcast %cst_66 : f32 to vector<8x32xf32>
      %106 = arith.mulf %105, %104 : vector<8x32xf32>
      %107 = vector.extract_strided_slice %59 {offsets = [0, 64], sizes = [8, 32], strides = [1, 1]} : vector<8x128xf32> to vector<8x32xf32>
      %108 = math.tanh %107 : vector<8x32xf32>
      %109 = vector.extract_strided_slice %59 {offsets = [0, 96], sizes = [8, 32], strides = [1, 1]} : vector<8x128xf32> to vector<8x32xf32>
      %cst_67 = arith.constant 5.000000e-01 : f32
      %110 = vector.broadcast %cst_67 : f32 to vector<8x32xf32>
      %111 = arith.mulf %110, %109 : vector<8x32xf32>
      %112 = math.tanh %111 : vector<8x32xf32>
      %cst_68 = arith.constant 1.000000e+00 : f32
      %113 = vector.broadcast %cst_68 : f32 to vector<8x32xf32>
      %114 = arith.addf %112, %113 : vector<8x32xf32>
      %cst_69 = arith.constant 5.000000e-01 : f32
      %115 = vector.broadcast %cst_69 : f32 to vector<8x32xf32>
      %116 = arith.mulf %115, %114 : vector<8x32xf32>
      %117 = arith.mulf %106, %arg23 : vector<8x32xf32>
      %118 = arith.mulf %98, %108 : vector<8x32xf32>
      %119 = arith.addf %117, %118 : vector<8x32xf32>
      %120 = math.tanh %119 : vector<8x32xf32>
      %121 = arith.mulf %116, %120 : vector<8x32xf32>
      %122 = vector.broadcast %arg19 : i32 to vector<8x1xi32>
      %123 = arith.cmpi slt, %122, %0 : vector<8x1xi32>
      %124 = vector.broadcast %47 : i32 to vector<8x1xi32>
      %125 = arith.cmpi slt, %124, %0 : vector<8x1xi32>
      %cst_70 = arith.constant 0.000000e+00 : f32
      %126 = vector.shape_cast %123 : vector<8x1xi1> to vector<8x1xi1>
      %127 = vector.broadcast %126 : vector<8x1xi1> to vector<8x32xi1>
      %128 = vector.broadcast %cst_70 : f32 to vector<8x32xf32>
      %129 = arith.select %127, %90, %128 : vector<8x32xi1>, vector<8x32xf32>
      %130 = arith.index_cast %49 : i32 to index
      %c0_71 = arith.constant 0 : index
      %131 = vector.load %arg17[%130, %c0_71] : memref<64x32xf32, #tpu.memory_space<vmem>>, vector<8x32xf32>
      tpu.vector_store %arg17[%130, %c0_71], %129 {strides = array<i32>} : memref<64x32xf32, #tpu.memory_space<vmem>>, vector<8x32xf32>,
      %cst_72 = arith.constant 0.000000e+00 : f32
      %132 = vector.shape_cast %125 : vector<8x1xi1> to vector<8x1xi1>
      %133 = vector.broadcast %132 : vector<8x1xi1> to vector<8x32xi1>
      %134 = vector.broadcast %cst_72 : f32 to vector<8x32xf32>
      %135 = arith.select %133, %121, %134 : vector<8x32xi1>, vector<8x32xf32>
      %136 = arith.index_cast %51 : i32 to index
      %c0_73 = arith.constant 0 : index
      %137 = vector.load %arg18[%136, %c0_73] : memref<64x32xf32, #tpu.memory_space<vmem>>, vector<8x32xf32>
      tpu.vector_store %arg18[%136, %c0_73], %135 {strides = array<i32>} : memref<64x32xf32, #tpu.memory_space<vmem>>, vector<8x32xf32>,
      %138 = vector.shape_cast %123 : vector<8x1xi1> to vector<8x1xi1>
      %139 = vector.broadcast %138 : vector<8x1xi1> to vector<8x32xi1>
      %140 = arith.select %139, %90, %arg20 : vector<8x32xi1>, vector<8x32xf32>
      %141 = vector.shape_cast %123 : vector<8x1xi1> to vector<8x1xi1>
      %142 = vector.broadcast %141 : vector<8x1xi1> to vector<8x32xi1>
      %143 = arith.select %142, %88, %arg21 : vector<8x32xi1>, vector<8x32xf32>
      %144 = vector.shape_cast %125 : vector<8x1xi1> to vector<8x1xi1>
      %145 = vector.broadcast %144 : vector<8x1xi1> to vector<8x32xi1>
      %146 = arith.select %145, %121, %arg22 : vector<8x32xi1>, vector<8x32xf32>
      %147 = vector.shape_cast %125 : vector<8x1xi1> to vector<8x1xi1>
      %148 = vector.broadcast %147 : vector<8x1xi1> to vector<8x32xi1>
      %149 = arith.select %148, %119, %arg23 : vector<8x32xi1>, vector<8x32xf32>
      scf.yield %140, %143, %146, %149 : vector<8x32xf32>, vector<8x32xf32>, vector<8x32xf32>, vector<8x32xf32>
    }
    %c8_i32_22 = arith.constant 8 : i32
    %20 = arith.addf %19#0, %19#2 : vector<8x32xf32>
    %c0_23 = arith.constant 0 : index
    %c0_24 = arith.constant 0 : index
    %21 = vector.load %arg13[%c0_23, %c0_24] : memref<8x32xf32, #tpu.memory_space<vmem>>, vector<8x32xf32>
    tpu.vector_store %arg13[%c0_23, %c0_24], %20 {strides = array<i32>} : memref<8x32xf32, #tpu.memory_space<vmem>>, vector<8x32xf32>,
    %22 = arith.addf %19#1, %19#3 : vector<8x32xf32>
    %c0_25 = arith.constant 0 : index
    %c0_26 = arith.constant 0 : index
    %23 = vector.load %arg14[%c0_25, %c0_26] : memref<8x32xf32, #tpu.memory_space<vmem>>, vector<8x32xf32>
    tpu.vector_store %arg14[%c0_25, %c0_26], %22 {strides = array<i32>} : memref<8x32xf32, #tpu.memory_space<vmem>>, vector<8x32xf32>,
    %c0_27 = arith.constant 0 : index
    %c0_28 = arith.constant 0 : index
    %24 = vector.load %arg17[%c0_27, %c0_28] : memref<64x32xf32, #tpu.memory_space<vmem>>, vector<64x32xf32>
    %c0_29 = arith.constant 0 : index
    %c0_30 = arith.constant 0 : index
    %25 = vector.load %arg9[%c0_29, %c0_30] : memref<32x64xf32, #tpu.memory_space<vmem>>, vector<32x64xf32>
    %cst_31 = arith.constant dense<0.000000e+00> : vector<64x64xf32>
    %26 = tpu.matmul %24, %25, %cst_31 {dimension_numbers = #tpu.dot_dimension_numbers<[1], [0], [0], [1], [0, 0, 1, 1], [], []>} : vector<64x32xf32>, vector<32x64xf32>, vector<64x64xf32> -> vector<64x64xf32>
    %c0_32 = arith.constant 0 : index
    %c0_33 = arith.constant 0 : index
    %27 = vector.load %arg18[%c0_32, %c0_33] : memref<64x32xf32, #tpu.memory_space<vmem>>, vector<64x32xf32>
    %c0_34 = arith.constant 0 : index
    %c0_35 = arith.constant 0 : index
    %28 = vector.load %arg10[%c0_34, %c0_35] : memref<32x64xf32, #tpu.memory_space<vmem>>, vector<32x64xf32>
    %cst_36 = arith.constant dense<0.000000e+00> : vector<64x64xf32>
    %29 = tpu.matmul %27, %28, %cst_36 {dimension_numbers = #tpu.dot_dimension_numbers<[1], [0], [0], [1], [0, 0, 1, 1], [], []>} : vector<64x32xf32>, vector<32x64xf32>, vector<64x64xf32> -> vector<64x64xf32>
    %30 = arith.addf %26, %29 : vector<64x64xf32>
    %c0_37 = arith.constant 0 : index
    %c0_38 = arith.constant 0 : index
    %31 = vector.load %arg11[%c0_37, %c0_38] : memref<1x64xf32, #tpu.memory_space<vmem>>, vector<1x64xf32>
    %32 = vector.broadcast %31 : vector<1x64xf32> to vector<64x64xf32>
    %33 = arith.addf %30, %32 : vector<64x64xf32>
    %cst_39 = arith.constant 0.000000e+00 : f32
    %34 = vector.broadcast %cst_39 : f32 to vector<64x64xf32>
    %35 = arith.cmpf ogt, %33, %34 : vector<64x64xf32>
    %36 = math.exp %33 : vector<64x64xf32>
    %cst_40 = arith.constant 1.000000e+00 : f32
    %37 = vector.broadcast %cst_40 : f32 to vector<64x64xf32>
    %38 = arith.subf %36, %37 : vector<64x64xf32>
    %cst_41 = arith.constant 1.67326319 : f32
    %39 = vector.broadcast %cst_41 : f32 to vector<64x64xf32>
    %40 = arith.mulf %39, %38 : vector<64x64xf32>
    %41 = arith.select %35, %33, %40 : vector<64x64xi1>, vector<64x64xf32>
    %cst_42 = arith.constant 1.05070102 : f32
    %42 = vector.broadcast %cst_42 : f32 to vector<64x64xf32>
    %43 = arith.mulf %42, %41 : vector<64x64xf32>
    %c0_43 = arith.constant 0 : index
    %c0_44 = arith.constant 0 : index
    %c0_45 = arith.constant 0 : index
    %44 = vector.load %arg12[%c0_43, %c0_44, %c0_45] : memref<1x64x64xf32, #tpu.memory_space<vmem>>, vector<1x64x64xf32>
    %45 = vector.shape_cast %44 : vector<1x64x64xf32> to vector<64x64xf32>
    %46 = vector.shape_cast %43 : vector<64x64xf32> to vector<1x64x64xf32>
    tpu.vector_store %arg12[%c0_43, %c0_44, %c0_45], %46 {strides = array<i32>} : memref<1x64x64xf32, #tpu.memory_space<vmem>>, vector<1x64x64xf32>,
    return
  }
  func.func @transform_0(%arg0: i32) -> (i32, i32) {
    %c0_i32 = arith.constant 0 : i32
    %c0_i32_0 = arith.constant 0 : i32
    return %arg0, %c0_i32 : i32, i32
  }
  func.func @transform_1(%arg0: i32) -> (i32, i32, i32) {
    %c0_i32 = arith.constant 0 : i32
    %c0_i32_0 = arith.constant 0 : i32
    %c0_i32_1 = arith.constant 0 : i32
    return %arg0, %c0_i32, %c0_i32_0 : i32, i32, i32
  }
  func.func @transform_2(%arg0: i32) -> (i32, i32) {
    %c0_i32 = arith.constant 0 : i32
    %c0_i32_0 = arith.constant 0 : i32
    %c0_i32_1 = arith.constant 0 : i32
    return %c0_i32, %c0_i32_0 : i32, i32
  }
  func.func @transform_3(%arg0: i32) -> (i32, i32) {
    %c0_i32 = arith.constant 0 : i32
    %c0_i32_0 = arith.constant 0 : i32
    %c0_i32_1 = arith.constant 0 : i32
    return %c0_i32, %c0_i32_0 : i32, i32
  }
  func.func @transform_4(%arg0: i32) -> (i32, i32) {
    %c0_i32 = arith.constant 0 : i32
    %c0_i32_0 = arith.constant 0 : i32
    %c0_i32_1 = arith.constant 0 : i32
    return %c0_i32, %c0_i32_0 : i32, i32
  }
  func.func @transform_5(%arg0: i32) -> (i32, i32) {
    %c0_i32 = arith.constant 0 : i32
    %c0_i32_0 = arith.constant 0 : i32
    %c0_i32_1 = arith.constant 0 : i32
    return %c0_i32, %c0_i32_0 : i32, i32
  }
  func.func @transform_6(%arg0: i32) -> (i32, i32) {
    %c0_i32 = arith.constant 0 : i32
    %c0_i32_0 = arith.constant 0 : i32
    %c0_i32_1 = arith.constant 0 : i32
    return %c0_i32, %c0_i32_0 : i32, i32
  }
  func.func @transform_7(%arg0: i32) -> (i32, i32) {
    %c0_i32 = arith.constant 0 : i32
    %c0_i32_0 = arith.constant 0 : i32
    %c0_i32_1 = arith.constant 0 : i32
    return %c0_i32, %c0_i32_0 : i32, i32
  }
  func.func @transform_8(%arg0: i32) -> (i32, i32) {
    %c0_i32 = arith.constant 0 : i32
    %c0_i32_0 = arith.constant 0 : i32
    %c0_i32_1 = arith.constant 0 : i32
    return %c0_i32, %c0_i32_0 : i32, i32
  }
  func.func @transform_9(%arg0: i32) -> (i32, i32) {
    %c0_i32 = arith.constant 0 : i32
    %c0_i32_0 = arith.constant 0 : i32
    %c0_i32_1 = arith.constant 0 : i32
    return %c0_i32, %c0_i32_0 : i32, i32
  }
  func.func @transform_10(%arg0: i32) -> (i32, i32) {
    %c0_i32 = arith.constant 0 : i32
    %c0_i32_0 = arith.constant 0 : i32
    %c0_i32_1 = arith.constant 0 : i32
    return %c0_i32, %c0_i32_0 : i32, i32
  }
  func.func @transform_11(%arg0: i32) -> (i32, i32, i32) {
    %c0_i32 = arith.constant 0 : i32
    %c0_i32_0 = arith.constant 0 : i32
    %c0_i32_1 = arith.constant 0 : i32
    return %arg0, %c0_i32, %c0_i32_0 : i32, i32, i32
  }
  func.func @transform_12(%arg0: i32) -> (i32, i32) {
    %c0_i32 = arith.constant 0 : i32
    %c0_i32_0 = arith.constant 0 : i32
    return %arg0, %c0_i32 : i32, i32
  }
  func.func @transform_13(%arg0: i32) -> (i32, i32) {
    %c0_i32 = arith.constant 0 : i32
    %c0_i32_0 = arith.constant 0 : i32
    return %arg0, %c0_i32 : i32, i32
  }
}

</mosaic_0001>

<bundles_post_ra>
// kernel: encoder_forward.1
= control target key start
LH: loop header
LB: loop body
LE: loop exit
PB: predicated region body
PF: predicated region fallthrough
CT: control target
= control target key end

     0   :  { %vm61_vm0 = vcmask 261120   ;;  %v1557_v63 = vmov 0.0   ;;  %s1723_s0 = inlined_call_operand.vmem [shape: s32[8,1], index: 0, kind: input, shape index: {}]   ;;  %s1724_s2 = inlined_call_operand.vmem [shape: f32[32,128], index: 2, kind: input, shape index: {}]   ;;  %s1725_s8 = inlined_call_operand.vmem [shape: f32[32,64], index: 8, kind: input, shape index: {}]   ;;  %s1726_s9 = inlined_call_operand.vmem [shape: f32[32,64], index: 9, kind: input, shape index: {}]   ;;  %s1727_s10 = inlined_call_operand.vmem [shape: f32[1,64], index: 10, kind: input, shape index: {}]   ;;  %s1728_s11 = inlined_call_operand.vmem [shape: f32[1,64,64], index: 11, kind: output, shape index: {0}]   ;;  %s1729_s12 = inlined_call_operand.vmem [shape: f32[8,32], index: 12, kind: output, shape index: {1}]   ;;  %s1730_s13 = inlined_call_operand.vmem [shape: f32[8,32], index: 13, kind: output, shape index: {2}]   ;;  %s1731_s3 = inlined_call_operand.vmem [shape: f32[32,128], index: 3, kind: input, shape index: {}]   ;;  %s1732_s1 = inlined_call_operand.vmem [shape: f32[1,64,32], index: 1, kind: input, shape index: {}]   ;;  %s1733_s6 = inlined_call_operand.vmem [shape: f32[32,128], index: 6, kind: input, shape index: {}]   ;;  %s1734_s7 = inlined_call_operand.vmem [shape: f32[32,128], index: 7, kind: input, shape index: {}]   ;;  %s1735_s4 = inlined_call_operand.vmem [shape: f32[1,128], index: 4, kind: input, shape index: {}]   ;;  %s1736_s5 = inlined_call_operand.vmem [shape: f32[1,128], index: 5, kind: input, shape index: {}]  }
   0x1   :  { %v1445_v0 = vld [vmem:[%s1723_s0] sm:$0xff]  ;;  %v51_v2 = vld [vmem:[%s1724_s2 + $0x8] sm:$0xff]  ;;  %v52_v6 = vld [vmem:[%s1724_s2 + $0x10] sm:$0xff] }
   0x2   :  { %v50_v1 = vld [vmem:[%s1724_s2] sm:$0xff]  ;;  %v200_v5 = vld [vmem:[%s1731_s3 + $0x8] sm:$0xff]  ;;  %v53_v8 = vld [vmem:[%s1724_s2 + $0x18] sm:$0xff] }
   0x3   :  { %v1194_v3 = vpack.c.bf16 %v51_v2, %v50_v1  ;;  %v199_v4 = vld [vmem:[%s1731_s3] sm:$0xff]  ;;  %v201_v9 = vld [vmem:[%s1731_s3 + $0x10] sm:$0xff]  ;;  %v202_v10 = vld [vmem:[%s1731_s3 + $0x18] sm:$0xff]  ;;  %v1198_v11 = vpack.c.bf16 %v53_v8, %v52_v6  ;;  %v1559_v1 = vmov 0.0   ;;  %v1561_v2 = vmov 0.0  }
   0x4   :  { %v1202_v7 = vpack.c.bf16 %v200_v5, %v199_v4  ;;  %v1206_v12 = vpack.c.bf16 %v202_v10, %v201_v9  ;;  %v42_v13 = vld [vmem:[%s1732_s1] sm:$0xff]  ;;  %v43_v14 = vld [vmem:[%s1732_s1 + $0x8] sm:$0xff]  ;;  %v44_v15 = vld [vmem:[%s1732_s1 + $0x10] sm:$0xff] }
   0x5   :  { %1195 = vmatprep.subr.bf16.mxu0 %v1194_v3  ;;  %1100 = vmatprep.mubr.msk.f32.mxu0 %vm61_vm0, %v42_v13  ;;  %v45_v16 = vld [vmem:[%s1732_s1 + $0x18] sm:$0xff]  ;;  %v46_v17 = vld [vmem:[%s1732_s1 + $0x20] sm:$0xff]  ;;  %v47_v18 = vld [vmem:[%s1732_s1 + $0x28] sm:$0xff] }
   0x6   :  { %1203 = vmatprep.subr.bf16.mxu1 %v1202_v7  ;;  %1197 = vmatpush3.bf16.msra.mxu0 %v1194_v3  ;;  %v48_v19 = vld [vmem:[%s1732_s1 + $0x30] sm:$0xff]  ;;  %v49_v20 = vld [vmem:[%s1732_s1 + $0x38] sm:$0xff]  ;;  %v1514_v21 = vld [vmem:[%s1733_s6] sm:$0xff]  ;;  %v1563_v3 = vmov 0.0  }
   0x7   :  { %1205 = vmatpush3.bf16.msra.mxu1 %v1202_v7  ;;  %1199 = vmatprep.subr.bf16.mxu0 %v1198_v11  ;;  %v1519_v22 = vld [vmem:[%s1733_s6 + $0x8] sm:$0xff]  ;;  %v1524_v23 = vld [vmem:[%s1733_s6 + $0x10] sm:$0xff]  ;;  %v1529_v24 = vld [vmem:[%s1733_s6 + $0x18] sm:$0xff] }
   0x8   :  { %1207 = vmatprep.subr.bf16.mxu1 %v1206_v12  ;;  %1120 = vmatprep.mubr.msk.f32.mxu1 %vm61_vm0, %v42_v13  ;;  %v1534_v25 = vld [vmem:[%s1734_s7] sm:$0xff]  ;;  %v1539_v26 = vld [vmem:[%s1734_s7 + $0x8] sm:$0xff]  ;;  %v1544_v27 = vld [vmem:[%s1734_s7 + $0x10] sm:$0xff] }
   0x9   :  { %v1549_v28 = vld [vmem:[%s1734_s7 + $0x18] sm:$0xff]  ;;  %v987_v29 = vld [vmem:[%s1735_s4] ss:$0 sm:$0xff]  ;;  %s1565_s4 = smov 0  }
   0xa   :  { %1201 = vmatpush3.bf16.msra.mxu0 %v1198_v11  ;;  %v996_v30 = vld [vmem:[%s1736_s5] ss:$0 sm:$0xff] }
   0xb   :  { %1209 = vmatpush3.bf16.msra.mxu1 %v1206_v12 }
   0xd   :  { %1101 = vmatmul.mubr.msk.f32.vlgmr.msra.gmra.mrb[0].mxu0 %vm61_vm0, %v43_v14 }
   0xe   :  { %1121 = vmatmul.mubr.msk.f32.vlgmr.msra.gmra.mrb[0].mxu1 %vm61_vm0, %v43_v14  ;;  %1103 = vmatprep.mubr.msk.f32.mxu0 %vm61_vm0, %v44_v15 }
   0xf   :  { %1123 = vmatprep.mubr.msk.f32.mxu1 %vm61_vm0, %v44_v15 }
  0x11   :  { %1104 = vmatmul.mubr.msk.f32.gmra.mrb[2].mxu0 %vm61_vm0, %v45_v16 }
  0x12   :  { %1124 = vmatmul.mubr.msk.f32.gmra.mrb[2].mxu1 %vm61_vm0, %v45_v16  ;;  %1106 = vmatprep.mubr.msk.f32.mxu0 %vm61_vm0, %v46_v17 }
  0x13   :  { %1126 = vmatprep.mubr.msk.f32.mxu1 %vm61_vm0, %v46_v17 }
  0x15   :  { %1107 = vmatmul.mubr.msk.f32.gmra.mrb[4].mxu0 %vm61_vm0, %v47_v18 }
  0x16   :  { %1127 = vmatmul.mubr.msk.f32.gmra.mrb[4].mxu1 %vm61_vm0, %v47_v18  ;;  %1109 = vmatprep.mubr.msk.f32.mxu0 %vm61_vm0, %v48_v19 }
  0x17   :  { %1129 = vmatprep.mubr.msk.f32.mxu1 %vm61_vm0, %v48_v19 }
  0x19   :  { %1110 = vmatmul.mubr.msk.f32.gmra.mrb[6].mxu0 %vm61_vm0, %v49_v20 }
  0x1a   :  { %1130 = vmatmul.mubr.msk.f32.gmra.mrb[6].mxu1 %vm61_vm0, %v49_v20 }
  0xe0   :  { %v1102_v31 = vpop.f32.mrb[0].mxu0 }
  0xe1   :  { %v158_v32 = vadd.f32 %v1102_v31, %v987_v29  ;;  %v1122_v33 = vpop.f32.mrb[0].mxu1  ;;  %v152_v34 = vpop.f32.mrb[1].mxu0 }
  0xe2   :  { %v282_v35 = vadd.f32 %v1122_v33, %v996_v30  ;;  %v153_v36 = vadd.f32 %v987_v29, %v152_v34  ;;  %v276_v37 = vpop.f32.mrb[1].mxu1 }
  0xe3   :  { %192 = vst [vmem:[#allocation2 + $0x8] sm:$0xff] %v158_v32  ;;  %v277_v38 = vadd.f32 %v996_v30, %v276_v37 }
  0xe4   :  { %316 = vst [vmem:[#allocation3 + $0x8] sm:$0xff] %v282_v35  ;;  %191 = vst [vmem:[#allocation2] sm:$0xff] %v153_v36  ;;  %v1105_v39 = vpop.f32.mrb[2].mxu0 }
  0xe5   :  { %315 = vst [vmem:[#allocation3] sm:$0xff] %v277_v38  ;;  %v168_v40 = vadd.f32 %v1105_v39, %v987_v29  ;;  %v1125_v41 = vpop.f32.mrb[2].mxu1  ;;  %v162_v42 = vpop.f32.mrb[3].mxu0 }
  0xe6   :  { %v292_v43 = vadd.f32 %v1125_v41, %v996_v30  ;;  %v163_v44 = vadd.f32 %v987_v29, %v162_v42  ;;  %v286_v45 = vpop.f32.mrb[3].mxu1 }
  0xe7   :  { %194 = vst [vmem:[#allocation2 + $0x18] sm:$0xff] %v168_v40  ;;  %v287_v46 = vadd.f32 %v996_v30, %v286_v45 }
  0xe8   :  { %318 = vst [vmem:[#allocation3 + $0x18] sm:$0xff] %v292_v43  ;;  %193 = vst [vmem:[#allocation2 + $0x10] sm:$0xff] %v163_v44  ;;  %v1108_v47 = vpop.f32.mrb[4].mxu0 }
  0xe9   :  { %317 = vst [vmem:[#allocation3 + $0x10] sm:$0xff] %v287_v46  ;;  %v178_v48 = vadd.f32 %v1108_v47, %v987_v29  ;;  %v1128_v49 = vpop.f32.mrb[4].mxu1  ;;  %v172_v50 = vpop.f32.mrb[5].mxu0 }
  0xea   :  { %v302_v51 = vadd.f32 %v1128_v49, %v996_v30  ;;  %v173_v52 = vadd.f32 %v987_v29, %v172_v50  ;;  %v296_v53 = vpop.f32.mrb[5].mxu1 }
  0xeb   :  { %196 = vst [vmem:[#allocation2 + $0x28] sm:$0xff] %v178_v48  ;;  %v297_v54 = vadd.f32 %v996_v30, %v296_v53 }
  0xec   :  { %320 = vst [vmem:[#allocation3 + $0x28] sm:$0xff] %v302_v51  ;;  %195 = vst [vmem:[#allocation2 + $0x20] sm:$0xff] %v173_v52  ;;  %v1111_v55 = vpop.f32.mrb[6].mxu0 }
  0xed   :  { %319 = vst [vmem:[#allocation3 + $0x20] sm:$0xff] %v297_v54  ;;  %v188_v56 = vadd.f32 %v1111_v55, %v987_v29  ;;  %v1131_v57 = vpop.f32.mrb[6].mxu1  ;;  %v182_v58 = vpop.f32.mrb[7].mxu0 }
  0xee   :  { %v312_v59 = vadd.f32 %v1131_v57, %v996_v30  ;;  %v183_v60 = vadd.f32 %v987_v29, %v182_v58  ;;  %v306_v61 = vpop.f32.mrb[7].mxu1 }
  0xef   :  { %198 = vst [vmem:[#allocation2 + $0x38] sm:$0xff] %v188_v56  ;;  %v307_v62 = vadd.f32 %v996_v30, %v306_v61 }
  0xf0   :  { %322 = vst [vmem:[#allocation3 + $0x38] sm:$0xff] %v312_v59  ;;  %197 = vst [vmem:[#allocation2 + $0x30] sm:$0xff] %v183_v60 }
  0xf1   :  { %321 = vst [vmem:[#allocation3 + $0x30] sm:$0xff] %v307_v62 }
  0xf2 LB: > { %v1211_v4 = vpack.c.bf16 %v1519_v22, %v1514_v21  ;;  %v1364_v5 = vmov 0.0|0.0   ;;  %v1217_v6 = vpack.c.bf16 %v1539_v26, %v1534_v25  ;;  %s1365_s5 = smov 32   ;;  %v1214_v7 = vpack.c.bf16 %v1529_v24, %v1524_v23  ;;  %s1005_s7 = sshll.u32 %s1362_s4, 3  ;;  %s1362_s4 = sphi %s1565_s4, %s336_s4   ;;  %v1358_v3 = vphi %v1563_v3, %v1740_v3   ;;  %v1354_v2 = vphi %v1561_v2, %v1739_v2   ;;  %v1350_v1 = vphi %v1559_v1, %v1738_v1   ;;  %v1346_v63 = vphi %v1557_v63, %v1737_v63  }
  0xf3   : > { %1210 = vmatprep.subr.bf16.mxu0 %v1364_v5  ;;  %1216 = vmatprep.subr.bf16.mxu1 %v1364_v5  ;;  %v1220_v8 = vpack.c.bf16 %v1549_v28, %v1544_v27  ;;  %vm1366_vm1 = vmmov 0   ;;  %v1367_v9 = vmov 0.0   ;;  %s341_s19 = ssub.s32 7, %s1362_s4  ;;  %s344_s21 = scalar_lea.vmem [#allocation2], %s1005_s7  ;;  %v1368_v20 = vmov 0  }
  0xf4   : > { %347 = vrot.lane.b32.xlu0 %v1358_v3, %s1365_s5  ;;  %1212 = vmatpush3.bf16.msra.mxu0 %v1211_v4  ;;  %s1600_s20 = sshll.u32 %s341_s19, 3  ;;  %s1369_s23 = smov 64   ;;  %v544_v36 = vstv %s1362_s4  ;;  %v546_v41 = vstv %s341_s19 }
  0xf5   : > { %1213 = vmatprep.subr.bf16.mxu0 %v1364_v5  ;;  %1218 = vmatpush3.bf16.msra.mxu1 %v1217_v6  ;;  %s422_s22 = scalar_lea.vmem [#allocation3], %s1600_s20  ;;  %vm545_vm2 = vcmp.lt.s32.totalorder %v544_v36, %v1445_v0  ;;  %vm547_vm3 = vcmp.lt.s32.totalorder %v546_v41, %v1445_v0  ;;  %s558_s24 = scalar_lea.vmem [#allocation4], %s1005_s7 }
  0xf6   : > { %1140 = vmatprep.mubr.msk.f32.mxu0 %vm1366_vm1, %v1367_v9  ;;  %1219 = vmatprep.subr.bf16.mxu1 %v1364_v5  ;;  %v548_v44 = vsel %vm545_vm2, 1, %v1368_v20  ;;  %v560_v46 = vsel %vm547_vm3, 1, %v1368_v20  ;;  %s570_s25 = scalar_lea.vmem [#allocation5], %s1600_s20  ;;  %s336_s4 = sadd.s32 1, %s1362_s4  }
  0xf7   : > { %1151 = vmatprep.mubr.msk.f32.mxu1 %vm1366_vm1, %v1367_v9  ;;  %v345_v12 = vld [vmem:[%s344_s21] sm:$0xff]  ;;  %1294 = vset.pattern.permute.xlu0 %v1368_v20  ;;  %p333_p0 = scmp.ge.s32.totalorder %s336_s4, 8  }
  0xf8   : > { %425 = vrot.lane.b32.xlu0 %v1350_v1, %s1365_s5  ;;  %1215 = vmatpush3.bf16.msra.mxu0 %v1214_v7  ;;  %v423_v16 = vld [vmem:[%s422_s22] sm:$0xff]  ;;  %v610_v0 = vld [vmem:[%s1726_s9 + $0x10] sm:$0xff] (%p333_p0)  ;;  %v611_v21 = vld [vmem:[%s1726_s9 + $0x18] sm:$0xff] (%p333_p0)  ;;  %vm941_vm7 = vcmask (%p333_p0), 523264  }
  0xf9   : > { %1221 = vmatpush3.bf16.msra.mxu1 %v1220_v8  ;;  %1295 = vset.pattern.permute.xlu1 %v1368_v20  ;;  %v609_v8 = vld [vmem:[%s1726_s9 + $0x8] sm:$0xff] (%p333_p0)  ;;  %v596_v9 = vld [vmem:[%s1725_s8] sm:$0xff] (%p333_p0)  ;;  %v1226_v23 = vpack.c.bf16 (%p333_p0), %v611_v21, %v610_v0  ;;  %v598_v24 = vld [vmem:[%s1725_s8 + $0x10] sm:$0xff] (%p333_p0) }
  0xfa   :  { %v599_v25 = vld [vmem:[%s1725_s8 + $0x18] sm:$0xff] (%p333_p0) }
  0xfb   :  { %v1234_v27 = vpack.c.bf16 (%p333_p0), %v599_v25, %v598_v24 }
 0x166   : > { %v348_v10 = vpop.permute.xlu0 %347 }
 0x167   : > { %1141 = vmatmul.mubr.msk.f32.vlgmr.msra.gmra.mrb[0].mxu0 %vm61_vm0, %v348_v10 }
 0x16a   : > { %v426_v11 = vpop.permute.xlu0 %425 }
 0x16b   : > { %1152 = vmatmul.mubr.msk.f32.vlgmr.msra.gmra.mrb[0].mxu1 %vm61_vm0, %v426_v11 }
 0x23a   : > { %v417_v13 = vpop.f32.mrb[0].mxu0 }
 0x23b   : > { %v421_v14 = vadd.f32 %v417_v13, %v345_v12  ;;  %v1142_v15 = vpop.f32.mrb[1].mxu0  ;;  %v597_v12 = vld [vmem:[%s1725_s8 + $0x8] sm:$0xff] (%p333_p0) }
 0x23c   :  { %v1230_v22 = vpack.c.bf16 (%p333_p0), %v597_v12, %v596_v9 }
 0x23d   : > { %1296 = vtanh.f32 %v421_v14  ;;  %v500_v31 = vmul.f32 0.5, %v421_v14 }
 0x23e   : > { %v495_v17 = vpop.f32.mrb[0].mxu1  ;;  %1231 = vmatprep.subr.bf16.mxu0 (%p333_p0), %v1230_v22 }
 0x23f   : > { %v499_v18 = vadd.f32 %v495_v17, %v423_v16  ;;  %v1153_v19 = vpop.f32.mrb[1].mxu1  ;;  %1233 = vmatpush3.bf16.msra.mxu0 (%p333_p0), %v1230_v22 }
 0x240   :  { %1235 = vmatprep.subr.bf16.mxu0 (%p333_p0), %v1234_v27 }
 0x241   : > { %1298 = vtanh.f32 %v499_v18  ;;  %v522_v32 = vmul.f32 0.5, %v499_v18 }
 0x242   : > { %1300 = vtanh.f32 %v500_v31 }
 0x243   : > { %1302 = vtanh.f32 %v522_v32  ;;  %1237 = vmatpush3.bf16.msra.mxu0 (%p333_p0), %v1234_v27 }
 0x247   : > { %v1297_v29 = vpop.eup %1296 }
 0x248   : > { %507 = vrot.lane.b32.xlu1 %v1297_v29, %s1369_s23 }
 0x24b   : > { %v1299_v30 = vpop.eup %1298 }
 0x24c   : > { %529 = vrot.lane.b32.xlu1 %v1299_v30, %s1369_s23  ;;  %v1301_v33 = vpop.eup %1300 }
 0x24d   : > { %v502_v34 = vadd.f32 1.0, %v1301_v33  ;;  %v1303_v35 = vpop.eup %1302 }
 0x24e   : > { %v524_v38 = vadd.f32 1.0, %v1303_v35 }
 0x24f   : > { %v503_v37 = vmul.f32 0.5, %v502_v34 }
 0x250   : > { %v525_v42 = vmul.f32 0.5, %v524_v38 }
 0x251   : > { %v505_v47 = vmul.f32 %v1354_v2, %v503_v37 }
 0x252   : > { %v527_v50 = vmul.f32 %v1346_v63, %v525_v42 }
 0x2ba   : > { %v508_v39 = vpop.permute.xlu1 %507 }
 0x2bb   : > { %v510_v40 = vmul.f32 %v508_v39, %v503_v37  ;;  %v1025_v39 = vld [vmem:[%s1727_s10] ss:$0 sm:$0xff] (%p333_p0) }
 0x2bd   : > { %512 = vrot.lane.b32.xlu0 %v510_v40, %s1365_s5 }
 0x2be   : > { %v530_v43 = vpop.permute.xlu1 %529 }
 0x2bf   : > { %v532_v45 = vmul.f32 %v530_v43, %v525_v42 }
 0x2c1   : > { %550 = vperm.xlu0 %1294, %v548_v44   ;;  %534 = vrot.lane.b32.xlu1 %v532_v45, %s1365_s5 }
 0x2c5   : > { %562 = vperm.xlu1 %1295, %v560_v46  }
 0x32f   : > { %v513_v48 = vpop.permute.xlu0 %512 }
 0x330   : > { %v515_v49 = vadd.f32 %v513_v48, %v505_v47 }
 0x332   : > { %1304 = vtanh.f32 %v515_v49 }
 0x333   : > { %v535_v51 = vpop.permute.xlu1 %534 }
 0x334   : > { %v537_v52 = vadd.f32 %v535_v51, %v527_v50 }
 0x336   : > { %1306 = vtanh.f32 %v537_v52 }
 0x33c   : > { %v1305_v53 = vpop.eup %1304 }
 0x33d   : > { %518 = vrot.lane.b32.xlu1 %v1305_v53, %s1369_s23 }
 0x340   : > { %v1307_v54 = vpop.eup %1306  ;;  %v551_v55 = vpop.permute.xlu0 %550 }
 0x341   : > { %vm552_vm4 = vcmp.eq.s32.totalorder %v551_v55, 1  ;;  %540 = vrot.lane.b32.xlu0 %v1307_v54, %s1369_s23 }
 0x342   : > { %v573_v56 = vsel %vm552_vm4, %v515_v49, %v1354_v2  }
 0x344   : > { %v563_v57 = vpop.permute.xlu1 %562 }
 0x345   : > { %vm564_vm5 = vcmp.eq.s32.totalorder %v563_v57, 1 }
 0x346   : > { %v575_v58 = vsel %vm564_vm5, %v537_v52, %v1346_v63  }
 0x3af   : > { %v519_v59 = vpop.permute.xlu1 %518 }
 0x3b0   : > { %v521_v60 = vmul.f32 %v519_v59, %v503_v37 }
 0x3b2   : > { %v572_v61 = vsel %vm552_vm4, %v521_v60, %v1358_v3   ;;  %v553_v62 = vsel %vm552_vm4, %v521_v60, 0.0 }
 0x3b3   : > { %555 = vrot.lane.b32.xlu1 %v553_v62, %s1365_s5  ;;  %v541_v4 = vpop.permute.xlu0 %540  ;;  %v1740_v3 = vmov %v572_v61 }
 0x3b4   : > { %v543_v5 = vmul.f32 %v541_v4, %v525_v42  ;;  %v608_v3 = vld [vmem:[%s1726_s9] sm:$0xff] (%p333_p0)  ;;  %s1371_s9 = smov (%p333_p0), 96  }
 0x3b5   :  { %v1222_v11 = vpack.c.bf16 (%p333_p0), %v609_v8, %v608_v3 }
 0x3b6   : > { %v574_v6 = vsel %vm564_vm5, %v543_v5, %v1350_v1   ;;  %v565_v7 = vsel %vm564_vm5, %v543_v5, 0.0 }
 0x3b7   : > { %567 = vrot.lane.b32.xlu0 %v565_v7, %s1365_s5  ;;  %v1738_v1 = vmov %v574_v6  ;;  %v576_v10 = vadd.f32 (%p333_p0), %v574_v6, %v572_v61  ;;  %s1370_s5 = smov (%p333_p0), 32   ;;  %1223 = vmatprep.subr.bf16.mxu1 (%p333_p0), %v1222_v11 }
 0x3b8   :  { %v582_v1 = vadd.f32 (%p333_p0), %v575_v58, %v573_v56  ;;  %1225 = vmatpush3.bf16.msra.mxu1 (%p333_p0), %v1222_v11 }
 0x3b9   :  { %1227 = vmatprep.subr.bf16.mxu1 (%p333_p0), %v1226_v23 }
 0x3bb   :  { %578 = vrot.lane.b32.xlu0 (%p333_p0), %v576_v10, %s1370_s5 }
 0x3bc   :  { %1229 = vmatpush3.bf16.msra.mxu1 (%p333_p0), %v1226_v23 }
 0x3bf   :  { %584 = vrot.lane.b32.xlu0 (%p333_p0), %v582_v1, %s1371_s9 }
 0x424   :  { %335 = sbr.rel (!%p333_p0) target bundleno = 242 (0xf2), region = 91 }
 0x425   : > { %v556_v2 = vpop.permute.xlu1 %555 }
 0x426   : > { %559 = vst.msk [vmem:[%s558_s24] sm:$0xff] %vm61_vm0, %v556_v2  ;;  %v1739_v2 = vmov %v573_v56 }
 0x429   : > { %v568_v63 = vpop.permute.xlu0 %567 }
 0x42a   : > { %571 = vst.msk [vmem:[%s570_s25] sm:$0xff] %vm61_vm0, %v568_v63  ;;  %v1737_v63 = vmov %v575_v58 }
 0x42d   :  { %v588_v28 = vld [vmem:[#allocation4] sm:$0xff]  ;;  %v589_v14 = vld [vmem:[#allocation4 + $0x8] sm:$0xff]  ;;  %v590_v16 = vld [vmem:[#allocation4 + $0x10] sm:$0xff]  ;;  %v579_v35 = vpop.permute.xlu0 %578 }
 0x42e   :  { %1182 = vmatprep.mubr.msk.f32.mxu0 %vm61_vm0, %v588_v28  ;;  %v591_v18 = vld [vmem:[#allocation4 + $0x18] sm:$0xff]  ;;  %v592_v20 = vld [vmem:[#allocation4 + $0x20] sm:$0xff]  ;;  %v593_v30 = vld [vmem:[#allocation4 + $0x28] sm:$0xff]  ;;  %581 = vst.msk [vmem:[%s1729_s12] sm:$0xff] %vm61_vm0, %v579_v35 }
 0x42f   :  { %1183 = vmatmul.mubr.msk.f32.vlgmr.msra.gmra.mrb[0].mxu0 %vm61_vm0, %v589_v14  ;;  %v594_v32 = vld [vmem:[#allocation4 + $0x30] sm:$0xff]  ;;  %v595_v34 = vld [vmem:[#allocation4 + $0x38] sm:$0xff] }
 0x430   :  { %1185 = vmatprep.mubr.msk.f32.mxu0 %vm61_vm0, %v590_v16 }
 0x431   :  { %v600_v26 = vld [vmem:[#allocation5] sm:$0xff]  ;;  %v601_v13 = vld [vmem:[#allocation5 + $0x8] sm:$0xff]  ;;  %v602_v15 = vld [vmem:[#allocation5 + $0x10] sm:$0xff]  ;;  %v585_v36 = vpop.permute.xlu0 %584 }
 0x432   :  { %1162 = vmatprep.mubr.msk.f32.mxu1 %vm61_vm0, %v600_v26  ;;  %v603_v17 = vld [vmem:[#allocation5 + $0x18] sm:$0xff]  ;;  %v604_v19 = vld [vmem:[#allocation5 + $0x20] sm:$0xff]  ;;  %v605_v29 = vld [vmem:[#allocation5 + $0x28] sm:$0xff]  ;;  %587 = vst.msk [vmem:[%s1730_s13] sm:$0xff] %vm61_vm0, %v585_v36 }
 0x433   :  { %1163 = vmatmul.mubr.msk.f32.vlgmr.msra.gmra.mrb[0].mxu1 %vm61_vm0, %v601_v13  ;;  %1186 = vmatmul.mubr.msk.f32.gmra.mrb[2].mxu0 %vm61_vm0, %v591_v18  ;;  %v606_v31 = vld [vmem:[#allocation5 + $0x30] sm:$0xff]  ;;  %v607_v33 = vld [vmem:[#allocation5 + $0x38] sm:$0xff] }
 0x434   :  { %1165 = vmatprep.mubr.msk.f32.mxu1 %vm61_vm0, %v602_v15  ;;  %1188 = vmatprep.mubr.msk.f32.mxu0 %vm61_vm0, %v592_v20 }
 0x437   :  { %1166 = vmatmul.mubr.msk.f32.gmra.mrb[2].mxu1 %vm61_vm0, %v603_v17  ;;  %1189 = vmatmul.mubr.msk.f32.gmra.mrb[4].mxu0 %vm61_vm0, %v593_v30 }
 0x438   :  { %1168 = vmatprep.mubr.msk.f32.mxu1 %vm61_vm0, %v604_v19  ;;  %1191 = vmatprep.mubr.msk.f32.mxu0 %vm61_vm0, %v594_v32 }
 0x43b   :  { %1169 = vmatmul.mubr.msk.f32.gmra.mrb[4].mxu1 %vm61_vm0, %v605_v29  ;;  %1192 = vmatmul.mubr.msk.f32.gmra.mrb[6].mxu0 %vm61_vm0, %v595_v34 }
 0x43c   :  { %1171 = vmatprep.mubr.msk.f32.mxu1 %vm61_vm0, %v606_v31 }
 0x43f   :  { %1172 = vmatmul.mubr.msk.f32.gmra.mrb[6].mxu1 %vm61_vm0, %v607_v33 }
 0x502   :  { %v1184_v38 = vpop.f32.mrb[0].mxu0 }
 0x503   :  { %v831_v42 = vpop.f32.mrb[1].mxu0 }
 0x506   :  { %v1164_v37 = vpop.f32.mrb[0].mxu1  ;;  %v1187_v47 = vpop.f32.mrb[2].mxu0 }
 0x507   :  { %v702_v40 = vpop.f32.mrb[1].mxu1  ;;  %v837_v41 = vadd.f32 %v1184_v38, %v1164_v37  ;;  %v841_v51 = vpop.f32.mrb[3].mxu0 }
 0x508   :  { %v832_v43 = vadd.f32 %v831_v42, %v702_v40 }
 0x509   :  { %v878_v44 = vadd.f32 %v1025_v39, %v837_v41 }
 0x50a   :  { %v1167_v45 = vpop.f32.mrb[2].mxu1  ;;  %v877_v46 = vadd.f32 %v1025_v39, %v832_v43  ;;  %v1190_v57 = vpop.f32.mrb[4].mxu0 }
 0x50b   :  { %v712_v48 = vpop.f32.mrb[3].mxu1  ;;  %v895_v49 = vmul.f32 1.442695, %v878_v44  ;;  %v847_v50 = vadd.f32 %v1187_v47, %v1167_v45  ;;  %v851_v61 = vpop.f32.mrb[5].mxu0  ;;  %vm886_vm6 = vcmp.gt.f32.partialorder %v878_v44, 0.0 }
 0x50c   :  { %v893_v52 = vmul.f32 1.442695, %v877_v46  ;;  %v842_v53 = vadd.f32 %v841_v51, %v712_v48  ;;  %vm885_vm8 = vcmp.gt.f32.partialorder %v877_v46, 0.0 }
 0x50d   :  { %1308 = vpow2.f32 %v895_v49  ;;  %v880_v54 = vadd.f32 %v1025_v39, %v847_v50 }
 0x50e   :  { %v1170_v55 = vpop.f32.mrb[4].mxu1  ;;  %1310 = vpow2.f32 %v893_v52  ;;  %v879_v56 = vadd.f32 %v1025_v39, %v842_v53  ;;  %v1193_v2 = vpop.f32.mrb[6].mxu0 }
 0x50f   :  { %v722_v58 = vpop.f32.mrb[5].mxu1  ;;  %v899_v59 = vmul.f32 1.442695, %v880_v54  ;;  %v857_v60 = vadd.f32 %v1190_v57, %v1170_v55  ;;  %v861_v9 = vpop.f32.mrb[7].mxu0  ;;  %vm888_vm9 = vcmp.gt.f32.partialorder %v880_v54, 0.0 }
 0x510   :  { %v897_v62 = vmul.f32 1.442695, %v879_v56  ;;  %v852_v4 = vadd.f32 %v851_v61, %v722_v58  ;;  %vm887_vm10 = vcmp.gt.f32.partialorder %v879_v56, 0.0 }
 0x511   :  { %1312 = vpow2.f32 %v899_v59  ;;  %v882_v5 = vadd.f32 %v1025_v39, %v857_v60 }
 0x512   :  { %v1173_v6 = vpop.f32.mrb[6].mxu1  ;;  %1314 = vpow2.f32 %v897_v62  ;;  %v881_v7 = vadd.f32 %v1025_v39, %v852_v4 }
 0x513   :  { %v732_v63 = vpop.f32.mrb[7].mxu1  ;;  %v903_v3 = vmul.f32 1.442695, %v882_v5  ;;  %v867_v8 = vadd.f32 %v1193_v2, %v1173_v6  ;;  %vm890_vm11 = vcmp.gt.f32.partialorder %v882_v5, 0.0 }
 0x514   :  { %v901_v10 = vmul.f32 1.442695, %v881_v7  ;;  %v862_v11 = vadd.f32 %v861_v9, %v732_v63  ;;  %vm889_vm12 = vcmp.gt.f32.partialorder %v881_v7, 0.0 }
 0x515   :  { %1316 = vpow2.f32 %v903_v3  ;;  %v884_v12 = vadd.f32 %v1025_v39, %v867_v8 }
 0x516   :  { %1318 = vpow2.f32 %v901_v10  ;;  %v883_v0 = vadd.f32 %v1025_v39, %v862_v11 }
 0x517   :  { %v1309_v21 = vpop.eup %1308  ;;  %v907_v22 = vmul.f32 1.442695, %v884_v12  ;;  %vm892_vm13 = vcmp.gt.f32.partialorder %v884_v12, 0.0 }
 0x518   :  { %v1311_v23 = vpop.eup %1310  ;;  %v1027_v24 = vadd.f32 -1.0, %v1309_v21  ;;  %v905_v25 = vmul.f32 1.442695, %v883_v0  ;;  %vm891_vm14 = vcmp.gt.f32.partialorder %v883_v0, 0.0 }
 0x519   :  { %v1026_v26 = vadd.f32 -1.0, %v1311_v23  ;;  %1320 = vpow2.f32 %v907_v22 }
 0x51a   :  { %v918_v27 = vmul.f32 1.6732632, %v1027_v24  ;;  %1322 = vpow2.f32 %v905_v25 }
 0x51b   :  { %v1313_v28 = vpop.eup %1312  ;;  %v917_v1 = vmul.f32 1.6732632, %v1026_v26 }
 0x51c   :  { %v1315_v13 = vpop.eup %1314  ;;  %v926_v14 = vsel %vm886_vm6, %v878_v44, %v918_v27  ;;  %v1029_v15 = vadd.f32 -1.0, %v1313_v28 }
 0x51d   :  { %v934_v16 = vmul.f32 1.050701, %v926_v14  ;;  %v925_v17 = vsel %vm885_vm8, %v877_v46, %v917_v1  ;;  %v1028_v18 = vadd.f32 -1.0, %v1315_v13 }
 0x51e   :  { %v933_v19 = vmul.f32 1.050701, %v925_v17  ;;  %v920_v20 = vmul.f32 1.6732632, %v1029_v15 }
 0x51f   :  { %v1317_v29 = vpop.eup %1316  ;;  %943 = vst.msk [vmem:[%s1728_s11 + $0x8] sm:$0xff] %vm941_vm7, %v934_v16  ;;  %v919_v30 = vmul.f32 1.6732632, %v1028_v18 }
 0x520   :  { %v1319_v31 = vpop.eup %1318  ;;  %942 = vst.msk [vmem:[%s1728_s11] sm:$0xff] %vm941_vm7, %v933_v19  ;;  %v928_v32 = vsel %vm888_vm9, %v880_v54, %v920_v20  ;;  %v1031_v33 = vadd.f32 -1.0, %v1317_v29 }
 0x521   :  { %v936_v34 = vmul.f32 1.050701, %v928_v32  ;;  %v927_v35 = vsel %vm887_vm10, %v879_v56, %v919_v30  ;;  %v1030_v36 = vadd.f32 -1.0, %v1319_v31 }
 0x522   :  { %v935_v37 = vmul.f32 1.050701, %v927_v35  ;;  %v922_v38 = vmul.f32 1.6732632, %v1031_v33 }
 0x523   :  { %v1321_v39 = vpop.eup %1320  ;;  %945 = vst.msk [vmem:[%s1728_s11 + $0x18] sm:$0xff] %vm941_vm7, %v936_v34  ;;  %v921_v40 = vmul.f32 1.6732632, %v1030_v36 }
 0x524   :  { %v1323_v41 = vpop.eup %1322  ;;  %944 = vst.msk [vmem:[%s1728_s11 + $0x10] sm:$0xff] %vm941_vm7, %v935_v37  ;;  %v930_v42 = vsel %vm890_vm11, %v882_v5, %v922_v38  ;;  %v1033_v43 = vadd.f32 -1.0, %v1321_v39 }
 0x525   :  { %v938_v44 = vmul.f32 1.050701, %v930_v42  ;;  %v929_v45 = vsel %vm889_vm12, %v881_v7, %v921_v40  ;;  %v1032_v46 = vadd.f32 -1.0, %v1323_v41 }
 0x526   :  { %v937_v47 = vmul.f32 1.050701, %v929_v45  ;;  %v924_v48 = vmul.f32 1.6732632, %v1033_v43 }
 0x527   :  { %947 = vst.msk [vmem:[%s1728_s11 + $0x28] sm:$0xff] %vm941_vm7, %v938_v44  ;;  %v923_v49 = vmul.f32 1.6732632, %v1032_v46 }
 0x528   :  { %946 = vst.msk [vmem:[%s1728_s11 + $0x20] sm:$0xff] %vm941_vm7, %v937_v47  ;;  %v932_v50 = vsel %vm892_vm13, %v884_v12, %v924_v48 }
 0x529   :  { %v940_v51 = vmul.f32 1.050701, %v932_v50  ;;  %v931_v52 = vsel %vm891_vm14, %v883_v0, %v923_v49 }
 0x52a   :  { %v939_v53 = vmul.f32 1.050701, %v931_v52 }
 0x52b   :  { %949 = vst.msk [vmem:[%s1728_s11 + $0x38] sm:$0xff] %vm941_vm7, %v940_v51 }
 0x52c   :  { %948 = vst.msk [vmem:[%s1728_s11 + $0x30] sm:$0xff] %vm941_vm7, %v939_v53 }

</bundles_post_ra>
